<compile_context>
chip_gen: v6e
topology: v6e:2x2x1
jax: 0.10.0
libtpu: 0.0.40
codegen_flags: <defaults>
</compile_context>

<pallas_src>
import jax
import jax.numpy as jnp
from jax.experimental import pallas as pl
from jax.experimental.pallas import tpu as pltpu


# ----------------------------------------------------------------------------
# Tile selection helpers (all static Python, decided at trace time).
# ----------------------------------------------------------------------------
def _round_up(x, m):
    return ((x + m - 1) // m) * m


def _divisor_tiles(padded, align, cap):
    """All multiples of `align` that divide `padded`, up to `cap` (ascending)."""
    ts = []
    t = align
    limit = min(cap, padded)
    while t <= limit:
        if padded % t == 0:
            ts.append(t)
        t += align
    return ts or [padded]


def _pick_tm(batch, cap=512):
    """(tm, Mp): full-batch block when small (no pad), else 8-aligned divisor."""
    if batch <= cap:
        return batch, batch
    mp = _round_up(batch, 8)
    return _divisor_tiles(mp, 8, cap)[-1], mp


def _pick_tk(kp, cap=2048):
    """tk dividing Kp; Kp is either the raw In (<=2048) or 128-aligned."""
    if kp % 128 != 0:          # ragged small-In case: single full-extent block
        return kp
    return _divisor_tiles(kp, 128, cap)[-1]


def _pick_tn(np_, m_blocks, cap=512):
    """tn dividing Np; prefer >=2 total parallel blocks for v7x megacore."""
    if np_ % 128 != 0:         # ragged small-Out case: single full-extent block
        return np_
    cands = _divisor_tiles(np_, 128, cap)
    for tn in reversed(cands):
        if m_blocks * (np_ // tn) >= 2:
            return tn
    return cands[-1]


def _vmem_limit_bytes():
    cap = 128 * 1024 * 1024
    try:
        cap = int(pltpu.get_tpu_info().vmem_capacity_bytes)
    except Exception:
        pass
    # ~75% of physical VMEM: ~48 MiB on v7x (64 MiB), ~96 MiB on v5e/v6e.
    return min(int(cap * 3 // 4), 100 * 1024 * 1024)


# ----------------------------------------------------------------------------
# Kernels
# ----------------------------------------------------------------------------
def _linear_kernel_single_k(x_ref, w_ref, b_ref, o_ref):
    # x_ref: [tm, Kp]  w_ref: [Kp, tn]  b_ref: [1, tn]  o_ref: [tm, tn]
    o_ref[...] = (
        jnp.dot(x_ref[...], w_ref[...], preferred_element_type=jnp.float32)
        + b_ref[...].astype(jnp.float32)
    ).astype(o_ref.dtype)


def _linear_kernel_multi_k(x_ref, w_ref, b_ref, o_ref, acc_ref):
    # x_ref: [tm, tk]  w_ref: [tk, tn]  b_ref: [1, tn]
    # o_ref: [tm, tn]  acc_ref: [tm, tn] f32 scratch
    k = pl.program_id(2)

    @pl.when(k == 0)
    def _():
        # Fold the bias into the accumulator init (saves a finalize add).
        acc_ref[...] = jnp.broadcast_to(
            b_ref[...].astype(jnp.float32), acc_ref.shape)

    acc_ref[...] += jnp.dot(x_ref[...], w_ref[...],
                            preferred_element_type=jnp.float32)

    @pl.when(k == pl.num_programs(2) - 1)
    def _():
        o_ref[...] = acc_ref[...].astype(o_ref.dtype)


# ----------------------------------------------------------------------------
# Parameter prep (one-time, outside the hot path) + wrapper
# ----------------------------------------------------------------------------
def prepare_linear_params(weight, bias, *, k_cap=2048, n_cap=512):
    """One-time prep of a PyTorch-convention Linear: W [Out, In], b [Out].

    Transposes to [In, Out] (canonical MXU contraction) and zero-pads only
    when the dim is both large and not 128-aligned.  Run once at init.
    """
    out_dim, in_dim = weight.shape
    kp = in_dim if (in_dim <= k_cap or in_dim % 128 == 0) else _round_up(in_dim, 128)
    np_ = out_dim if (out_dim <= n_cap or out_dim % 128 == 0) else _round_up(out_dim, 128)

    w_t = weight.T                                  # [In, Out], init-time only
    if (kp, np_) != (in_dim, out_dim):
        w_t = jnp.pad(w_t, ((0, kp - in_dim), (0, np_ - out_dim)))
    b2 = bias.reshape(1, out_dim)
    if np_ != out_dim:
        b2 = jnp.pad(b2, ((0, 0), (0, np_ - out_dim)))

    return {"w_t": w_t, "b": b2, "in": in_dim, "out": out_dim}


def linear_pallas(x, params):
    """x: [B, In]; params: output of prepare_linear_params. Returns [B, Out]."""
    w_t, b2 = params["w_t"], params["b"]
    in_dim, out_dim = params["in"], params["out"]
    batch = x.shape[0]
    assert x.shape[1] == in_dim
    kp, np_ = w_t.shape

    tm, mp = _pick_tm(batch)
    m_blocks = mp // tm
    tk = _pick_tk(kp)
    k_blocks = kp // tk
    tn = _pick_tn(np_, m_blocks)
    n_blocks = np_ // tn

    # x only needs padding in the rare large-ragged cases (B > 512 not %8,
    # or In > 2048 not %128); never for the module's small shapes.
    if (mp, kp) != (batch, in_dim):
        x = jnp.pad(x, ((0, mp - batch), (0, kp - in_dim)))

    compiler_params = pltpu.CompilerParams(
        dimension_semantics=(("parallel", "parallel", "arbitrary")
                             if k_blocks > 1 else ("parallel", "parallel")),
        vmem_limit_bytes=_vmem_limit_bytes(),
    )

    if k_blocks == 1:
        out_padded = pl.pallas_call(
            _linear_kernel_single_k,
            out_shape=jax.ShapeDtypeStruct((mp, np_), x.dtype),
            grid_spec=pltpu.PrefetchScalarGridSpec(
                num_scalar_prefetch=0,
                grid=(m_blocks, n_blocks),
                in_specs=[
                    pl.BlockSpec((tm, kp), lambda i, j: (i, 0)),   # x
                    pl.BlockSpec((kp, tn), lambda i, j: (0, j)),   # W^T [In, Out]
                    pl.BlockSpec((1, tn), lambda i, j: (0, j)),    # bias
                ],
                out_specs=pl.BlockSpec((tm, tn), lambda i, j: (i, j)),
            ),
            compiler_params=compiler_params,
        )(x, w_t, b2)
    else:
        out_padded = pl.pallas_call(
            _linear_kernel_multi_k,
            out_shape=jax.ShapeDtypeStruct((mp, np_), x.dtype),
            grid_spec=pltpu.PrefetchScalarGridSpec(
                num_scalar_prefetch=0,
                grid=(m_blocks, n_blocks, k_blocks),
                in_specs=[
                    pl.BlockSpec((tm, tk), lambda i, j, k: (i, k)),   # x
                    pl.BlockSpec((tk, tn), lambda i, j, k: (k, j)),   # W^T
                    pl.BlockSpec((1, tn), lambda i, j, k: (0, j)),    # bias
                ],
                out_specs=pl.BlockSpec((tm, tn), lambda i, j, k: (i, j)),
                scratch_shapes=[pltpu.VMEM((tm, tn), jnp.float32)],
            ),
            compiler_params=compiler_params,
        )(x, w_t, b2)

    if (mp, np_) != (batch, out_dim):
        out_padded = out_padded[:batch, :out_dim]
    return out_padded


def test_nn_forward(nn_input, hidden, params):
    """Mirrors _TestNN.forward: returns (decoder(nn_input), hidden)."""
    # TODO(synk): `forward_called` is Python-side module state with no device
    # equivalent; intentionally not modeled.
    output = linear_pallas(nn_input, params)
    return output, hidden


if __name__ == "__main__":
    key = jax.random.PRNGKey(0)
    k_x, k_h, k_w, k_b = jax.random.split(key, 4)

    # Small shapes matching the module's spirit.
    batch, input_size, output_size = 8, 32, 32

    nn_input = jax.random.normal(k_x, (batch, input_size), dtype=jnp.float32)
    hidden = jax.random.normal(k_h, (batch, output_size), dtype=jnp.float32)

    # PyTorch Linear init: U(-1/sqrt(in), 1/sqrt(in)).
    bound = 1.0 / jnp.sqrt(jnp.float32(input_size))
    weight = jax.random.uniform(k_w, (output_size, input_size),
                                minval=-bound, maxval=bound, dtype=jnp.float32)
    bias = jax.random.uniform(k_b, (output_size,),
                              minval=-bound, maxval=bound, dtype=jnp.float32)

    params = prepare_linear_params(weight, bias)     # one-time param prep
    out, hid = test_nn_forward(nn_input, hidden, params)
    jax.block_until_ready((out, hid))

    ref = nn_input @ weight.T + bias
    assert out.shape == (batch, output_size)
    assert jnp.allclose(out, ref, atol=1e-5, rtol=1e-5)
    assert jnp.array_equal(hid, hidden)

    # Second check: In=4096 > tk_cap -> multi K-step accumulator path (tk=2048),
    # Out=384 -> tn=128 (3 real N blocks, zero padding anywhere).
    B2, In2, Out2 = 16, 4096, 384
    k_x2, k_w2, k_b2 = jax.random.split(jax.random.PRNGKey(1), 3)
    x2 = jax.random.normal(k_x2, (B2, In2), dtype=jnp.float32)
    w2 = jax.random.normal(k_w2, (Out2, In2), dtype=jnp.float32) * 0.02
    b2 = jax.random.normal(k_b2, (Out2,), dtype=jnp.float32)
    out2 = linear_pallas(x2, prepare_linear_params(w2, b2))
    jax.block_until_ready(out2)
    ref2 = x2 @ w2.T + b2
    assert out2.shape == (B2, Out2)
    assert jnp.allclose(out2, ref2, atol=2e-3, rtol=2e-3)

    print("KERNEL_OK")
</pallas_src>

<mosaic_0001>
module attributes {stable_mosaic.version = 11 : i64} {
  func.func @_linear_kernel_single_k(%arg0: i32, %arg1: i32, %arg2: memref<8x32xf32, #tpu.memory_space<vmem>>, %arg3: memref<32x32xf32, #tpu.memory_space<vmem>>, %arg4: memref<1x32xf32, #tpu.memory_space<vmem>>, %arg5: memref<8x32xf32, #tpu.memory_space<vmem>>) attributes {dimension_semantics = [#tpu.dimension_semantics<parallel>, #tpu.dimension_semantics<parallel>], iteration_bounds = array<i64: 1, 1>, scalar_prefetch = 0 : i64, scratch_operands = 0 : i64, tpu.core_type = #tpu.core_type<tc>, window_params = [{transform_indices = @transform_0, window_bounds = array<i64: 8, 32>}, {transform_indices = @transform_1, window_bounds = array<i64: 32, 32>}, {transform_indices = @transform_2, window_bounds = array<i64: 1, 32>}, {transform_indices = @transform_3, window_bounds = array<i64: 8, 32>}]} {
    %c0 = arith.constant 0 : index
    %c0_0 = arith.constant 0 : index
    %0 = vector.load %arg2[%c0, %c0_0] : memref<8x32xf32, #tpu.memory_space<vmem>>, vector<8x32xf32>
    %c0_1 = arith.constant 0 : index
    %c0_2 = arith.constant 0 : index
    %1 = vector.load %arg3[%c0_1, %c0_2] : memref<32x32xf32, #tpu.memory_space<vmem>>, vector<32x32xf32>
    %cst = arith.constant dense<0.000000e+00> : vector<8x32xf32>
    %2 = tpu.matmul %0, %1, %cst {dimension_numbers = #tpu.dot_dimension_numbers<[1], [0], [0], [1], [0, 0, 1, 1], [], []>} : vector<8x32xf32>, vector<32x32xf32>, vector<8x32xf32> -> vector<8x32xf32>
    %c0_3 = arith.constant 0 : index
    %c0_4 = arith.constant 0 : index
    %3 = vector.load %arg4[%c0_3, %c0_4] : memref<1x32xf32, #tpu.memory_space<vmem>>, vector<1x32xf32>
    %4 = vector.broadcast %3 : vector<1x32xf32> to vector<8x32xf32>
    %5 = arith.addf %2, %4 : vector<8x32xf32>
    %c0_5 = arith.constant 0 : index
    %c0_6 = arith.constant 0 : index
    %6 = vector.load %arg5[%c0_5, %c0_6] : memref<8x32xf32, #tpu.memory_space<vmem>>, vector<8x32xf32>
    tpu.vector_store %arg5[%c0_5, %c0_6], %5 {strides = array<i32>} : memref<8x32xf32, #tpu.memory_space<vmem>>, vector<8x32xf32>,
    return
  }
  func.func @transform_0(%arg0: i32, %arg1: i32) -> (i32, i32) {
    %c0_i32 = arith.constant 0 : i32
    %c0_i32_0 = arith.constant 0 : i32
    return %arg0, %c0_i32 : i32, i32
  }
  func.func @transform_1(%arg0: i32, %arg1: i32) -> (i32, i32) {
    %c0_i32 = arith.constant 0 : i32
    %c0_i32_0 = arith.constant 0 : i32
    return %c0_i32, %arg1 : i32, i32
  }
  func.func @transform_2(%arg0: i32, %arg1: i32) -> (i32, i32) {
    %c0_i32 = arith.constant 0 : i32
    %c0_i32_0 = arith.constant 0 : i32
    return %c0_i32, %arg1 : i32, i32
  }
  func.func @transform_3(%arg0: i32, %arg1: i32) -> (i32, i32) {
    %c0_i32 = arith.constant 0 : i32
    return %arg0, %arg1 : i32, i32
  }
}

</mosaic_0001>

<bundles_post_ra>
// kernel: tpu_custom_call.1
= control target key start
LH: loop header
LB: loop body
LE: loop exit
PB: predicated region body
PF: predicated region fallthrough
CT: control target
= control target key end

     0   :  { %8 = vsyncpa [#allocation3], 0  ;;  %s274_s0 = inlined_call_operand.hbm [shape: f32[8,32], index: 0, kind: input, shape index: {}]   ;;  %s275_s1 = inlined_call_operand.hbm [shape: f32[32,32], index: 1, kind: input, shape index: {}]   ;;  %s276_s2 = inlined_call_operand.vmem [shape: f32[1,32], index: 2, kind: input, shape index: {}]   ;;  %s277_s3 = inlined_call_operand.hbm [shape: f32[8,32], index: 3, kind: output, shape index: {}]  }
   0x1   :  { %9 = vsyncpa [#allocation6], 0 }
   0x2   :  { %10 = vsyncpa [#allocation4], 0  ;;  %s235_s12 = smov [#allocation2]   ;;  %s236_s14 = smov [#allocation5]  }
   0x3   :  { %s17_s13 = sshll.u32 %s235_s12, 4  ;;  %s26_s15 = sshll.u32 %s236_s14, 4  ;;  %s18_s13 = int_to_ptr.vmem [resolvable:$true] %s17_s13  ;;  %s27_s15 = int_to_ptr.vmem [resolvable:$true] %s26_s15 }
   0x4   :  { %s177_s16 = scalar_lea.vmem %s18_s13, 128  ;;  %p182_p1 = scmp.lt.s32.totalorder %s18_s13, %s18_s13 }
   0x5   :  { %p178_p0 = scmp.ne.s32.totalorder %s18_s13, %s177_s16  ;;  %p183_p2 = scmp.lt.s32.totalorder %s177_s16, %s177_s16 }
   0x7   :  { %p184_p3 = por %p183_p2, %p182_p1 }
   0x9   :  { %p185_p4 = pnand %p184_p3, %p178_p0 }
   0xb   :  { %188 = shalt.err (!%p185_p4)
}
   0xc   :  { %20 = dma.hbm_to_vmem [thread:$0]  %s274_s0, 128, %s18_s13, [#allocation3]  }
   0xd   :  { %s197_s19 = scalar_lea.vmem %s27_s15, 512  ;;  %p202_p6 = scmp.lt.s32.totalorder %s27_s15, %s27_s15 }
   0xe   :  { %p198_p5 = scmp.ne.s32.totalorder %s27_s15, %s197_s19  ;;  %p203_p7 = scmp.lt.s32.totalorder %s197_s19, %s197_s19 }
  0x10   :  { %p204_p8 = por %p203_p7, %p202_p6 }
  0x12   :  { %p205_p9 = pnand %p204_p8, %p198_p5 }
  0x14   :  { %208 = shalt.err (!%p205_p9)
}
  0x15   :  { %s237_s20 = smov 128   ;;  %s238_s21 = smov 8  }
  0x16   :  { %32 = dma.hbm_to_vmem [thread:$0]  %s275_s1, 512, %s27_s15, [#allocation6], %s237_s20, %s237_s20, %s238_s21  }
  0x17   :  { %229 = dma.done.wait [#allocation3], 128  }
  0x18   :  { %230 = vsyncadd [#allocation3], 4294967168 }
  0x19   :  { %231 = dma.done.wait [#allocation6], 512  }
  0x1a   :  { %232 = vsyncadd [#allocation6], 4294966784  ;;  %v239_v0 = vmov 0.0   ;;  %vm240_vm0 = vmmov 0   ;;  %v45_v1 = vld [vmem:[#allocation5 + $0x18] sm:$0xff]  ;;  %v44_v2 = vld [vmem:[#allocation5 + $0x10] sm:$0xff] }
  0x1b   :  { %151 = vmatprep.subr.mxu0 %v239_v0  ;;  %159 = vmatprep.mubr.msk.f32.mxu0 %vm240_vm0, %v239_v0  ;;  %v43_v3 = vld [vmem:[#allocation5 + $0x8] sm:$0xff]  ;;  %v42_v4 = vld [vmem:[#allocation5] sm:$0xff]  ;;  %v41_v5 = vld [vmem:[#allocation2] sm:$0xff]  ;;  %vm53_vm1 = vcmask 261120   ;;  %s241_s24 = smov [#allocation7]  }
  0x1c   :  { %152 = vmatpush3.msra.mxu0 %v45_v1  ;;  %v144_v6 = vld [vmem:[%s276_s2] ss:$0 sm:$0xff]  ;;  %s134_s25 = sshll.u32 %s241_s24, 4  ;;  %s135_s25 = int_to_ptr.vmem [resolvable:$true] %s134_s25 }
  0x1d   :  { %153 = vmatprep.subr.mxu0 %v239_v0  ;;  %s209_s26 = scalar_lea.vmem %s135_s25, 128  ;;  %p214_p11 = scmp.lt.s32.totalorder %s135_s25, %s135_s25 }
  0x1e   :  { %154 = vmatpush3.msra.mxu0 %v44_v2  ;;  %p210_p10 = scmp.ne.s32.totalorder %s135_s25, %s209_s26  ;;  %p215_p12 = scmp.lt.s32.totalorder %s209_s26, %s209_s26 }
  0x1f   :  { %155 = vmatprep.subr.mxu0 %v239_v0 }
  0x20   :  { %156 = vmatpush3.msra.mxu0 %v43_v3  ;;  %p216_p13 = por %p215_p12, %p214_p11 }
  0x21   :  { %157 = vmatprep.subr.mxu0 %v239_v0 }
  0x22   :  { %158 = vmatpush3.msra.mxu0 %v42_v4  ;;  %p217_p0 = pnand %p216_p13, %p210_p10 }
  0x23   :  { %160 = vmatmul.mubr.msk.f32.vlgmr.msra.gmra.mxu0 %vm53_vm1, %v41_v5 }
  0xe3   :  { %v123_v7 = vpop.f32.mrf.mxu0 }
  0xe4   :  { %v124_v8 = vadd.f32 %v144_v6, %v123_v7 }
  0xe5   :  { %v161_v9 = vpop.f32.mrf.mxu0 }
  0xe6   :  { %127 = vst.msk [vmem:[#allocation7] sm:$0xff] %vm53_vm1, %v124_v8 }
  0xe7   :  { %220 = shalt.err (!%p217_p0)
}
  0xe8   :  { %137 = dma.vmem_to_hbm [thread:$0]  %s135_s25, 128, %s277_s3, [#allocation4]  }
  0xe9   :  { %233 = dma.done.wait [#allocation4], 128  }
  0xea   :  { %234 = vsyncadd [#allocation4], 4294967168 }
  0xeb   :  { %141 = vsyncpa [#allocation3], 1 }
  0xec   :  { %142 = vsyncpa [#allocation6], 1 }
  0xed   :  { %143 = vsyncpa [#allocation4], 1 }

</bundles_post_ra>
